<compile_context>
chip_gen: v7x
topology: tpu7x:2x2x1
jax: 0.10.0
libtpu: 0.0.40
codegen_flags: <defaults>
</compile_context>

<pallas_src>
import jax
import jax.numpy as jnp
from jax.experimental import pallas as pl
from jax.experimental.pallas import tpu as pltpu


def _fusion_kernel(x_ref, w1_ref, b1_ref, w2_ref, o_ref):
    """One grid step processes a (Bt, S, D) slab of batches.

    Perf notes:
      * The first Linear is ONE (Bt*S, D) @ (D, H) MXU matmul per grid step
        (leading-dim collapse is a layout no-op) -> amortizes the ~0.35 us/step
        pipeline overhead and keeps MXU occupancy high.
      * The context-vector projection (N=1 output column) is NOT an MXU matmul:
        w2 is passed lane-dense as (1, H) and the score is a VPU multiply +
        lane (XLU) reduce — uses otherwise-idle slots and avoids a lane-sparse
        (H, 1) operand / lane-width-1 MXU result.
      * Softmax over the sequence axis is fully vectorized over the batch tile
        (no Python per-batch unroll), and the whole (Bt, S, D) output slab is
        written with a single store (lane-dense when D is a multiple of 128).
      * Softmax denominator uses the EUP approximate reciprocal (free slot).
      * Weight specs use a constant index_map, so Pallas keeps them resident in
        VMEM across grid steps instead of re-DMAing.
    """
    Bt, S, D = x_ref.shape
    x3 = x_ref[...]                                   # (Bt, S, D)

    # Leading-dim collapse (lane dim unchanged -> layout no-op).
    x2 = x3.reshape(Bt * S, D)

    # h = tanh(x @ W1 + b1)  -- single fused MXU call for all Bt*S rows.
    # MXU operands take w1's dtype (bf16 on v6e/v7x if requested in wrapper);
    # accumulation stays f32.
    h = jnp.tanh(
        jnp.dot(x2.astype(w1_ref.dtype), w1_ref[...],
                preferred_element_type=jnp.float32)
        + b1_ref[...]                                 # (1, H) broadcasts over rows
    )                                                 # (Bt*S, H) f32

    # attention logits: VPU multiply with lane-dense (1, H) w2 + lane reduce.
    s2 = jnp.sum(h * w2_ref[...], axis=-1, keepdims=True)     # (Bt*S, 1)
    s3 = s2.reshape(Bt, S, 1)                         # leading-dim split, layout no-op

    # Numerically-stable softmax over the sequence axis, vectorized over the
    # whole batch tile (sublane reduce per batch row; broadcast back over S).
    s3 = s3 - jnp.max(s3, axis=1, keepdims=True)
    e = jnp.exp(s3)
    p = e * pl.reciprocal(jnp.sum(e, axis=1, keepdims=True), approx=True)

    # attended_inputs = inputs * attention_scores (broadcast over D).
    # Single whole-slab store: with D < 128 this is one masked partial vst per
    # row group; for realistic D >= 128 it is fully lane-dense / unmasked.
    o_ref[...] = (x3 * p).astype(o_ref.dtype)


def fusion_module(x, w1, b1, w2, *, batch_tile=None, mxu_dtype=jnp.float32):
    """x: (B, S, D); w1: (D, H); b1: (H,); w2: (H, 1).

    batch_tile: batches processed per grid step. Default picks the largest
      divisor of B whose working set fits comfortably in VMEM while keeping
      >= 2 grid steps when B allows (so both v7x TensorCores get work via the
      'parallel' axis). On v5e/v6e a single big block (batch_tile=B) is fine.
    mxu_dtype: set jnp.bfloat16 on v6e/v7x to use the bf16-native MXU (and
      halve the W1 DMA bytes); accumulation stays f32. Keep f32 for bit-accuracy.
    """
    B, S, D = x.shape
    H = w1.shape[1]

    if batch_tile is None:
        # Per-batch-row VMEM footprint: double-buffered input + output blocks,
        # plus f32 hidden activations and the f32 score column.
        itemsize = jnp.dtype(x.dtype).itemsize
        per_row = 4 * S * D * itemsize + S * H * 4 + S * D * 4
        budget = 12 * 1024 * 1024
        cand = [t for t in range(1, B + 1) if B % t == 0 and t * per_row <= budget]
        if not cand:
            batch_tile = 1
        else:
            # Biggest tile that fits, but keep >= 2 grid steps when possible.
            fits_half = [t for t in cand if t <= max(1, B // 2)]
            batch_tile = max(fits_half) if (B >= 2 and fits_half) else max(cand)
    assert B % batch_tile == 0, "B must be divisible by batch_tile"
    num_steps = B // batch_tile

    b1_row = b1.reshape(1, H).astype(jnp.float32)
    w2_row = w2.reshape(1, H).astype(jnp.float32)      # lane-dense context vector
    w1_m = w1.astype(mxu_dtype)

    # TODO(synk): for very large S (when batch_tile*S*D bytes approach the VMEM
    # limit — threshold ~2x lower on v7x's 64 MiB), switch to a two-pass
    # S-tiled variant with an online/two-pass softmax instead of keeping the
    # full (S, D) slab resident.
    return pl.pallas_call(
        _fusion_kernel,
        out_shape=jax.ShapeDtypeStruct((B, S, D), x.dtype),
        grid_spec=pltpu.PrefetchScalarGridSpec(
            num_scalar_prefetch=0,
            grid=(num_steps,),
            in_specs=[
                pl.BlockSpec((batch_tile, S, D), lambda i: (i, 0, 0)),
                pl.BlockSpec((D, H), lambda i: (0, 0)),
                pl.BlockSpec((1, H), lambda i: (0, 0)),
                pl.BlockSpec((1, H), lambda i: (0, 0)),
            ],
            out_specs=pl.BlockSpec((batch_tile, S, D), lambda i: (i, 0, 0)),
        ),
        compiler_params=pltpu.CompilerParams(
            dimension_semantics=("parallel",),
            # Explicit limit so the same tiling stays safe under v7x's smaller
            # (64 MiB physical / 32 MiB default scoped) VMEM budget.
            vmem_limit_bytes=32 * 1024 * 1024,
        ),
    )(x, w1_m, b1_row, w2_row)


def fusion_module_ref(x, w1, b1, w2):
    w = jnp.tanh(x @ w1 + b1)                  # (B, S, H)
    s = w @ w2                                 # (B, S, 1)
    p = jax.nn.softmax(s, axis=1)              # softmax over seq (dim=1)
    return x * p


if __name__ == "__main__":
    B, S, D, H = 4, 8, 32, 16                  # small shapes; batch_tile=2 -> grid=(2,)
    key = jax.random.PRNGKey(0)
    kx, kw1, kb1, kw2 = jax.random.split(key, 4)

    x = jax.random.normal(kx, (B, S, D), dtype=jnp.float32)
    # Deterministic param init (synthetic; mimics the Linear layer shapes).
    w1 = jax.random.normal(kw1, (D, H), dtype=jnp.float32) * (1.0 / jnp.sqrt(D))
    b1 = jax.random.normal(kb1, (H,), dtype=jnp.float32) * 0.1
    w2 = jax.random.normal(kw2, (H, 1), dtype=jnp.float32) * (1.0 / jnp.sqrt(H))

    ref = fusion_module_ref(x, w1, b1, w2)

    # Default f32-MXU path; tolerance slack only covers the approx reciprocal.
    out = jax.block_until_ready(fusion_module(x, w1, b1, w2))
    assert out.shape == (B, S, D)
    assert jnp.allclose(out, ref, atol=5e-3, rtol=5e-3)

    # bf16-MXU path (recommended on v6e/v7x); looser tolerance for bf16 operands.
    out_bf16 = jax.block_until_ready(
        fusion_module(x, w1, b1, w2, mxu_dtype=jnp.bfloat16))
    assert jnp.allclose(out_bf16, ref, atol=5e-2, rtol=5e-2)

    print("KERNEL_OK")
</pallas_src>

<mosaic_0001>
module attributes {stable_mosaic.version = 11 : i64} {
  func.func @_fusion_kernel(%arg0: i32, %arg1: memref<2x8x32xf32, #tpu.memory_space<vmem>>, %arg2: memref<32x16xf32, #tpu.memory_space<vmem>>, %arg3: memref<1x16xf32, #tpu.memory_space<vmem>>, %arg4: memref<1x16xf32, #tpu.memory_space<vmem>>, %arg5: memref<2x8x32xf32, #tpu.memory_space<vmem>>) attributes {dimension_semantics = [#tpu.dimension_semantics<parallel>], iteration_bounds = array<i64: 2>, scalar_prefetch = 0 : i64, scratch_operands = 0 : i64, tpu.core_type = #tpu.core_type<tc>, window_params = [{transform_indices = @transform_0, window_bounds = array<i64: 2, 8, 32>}, {pipeline_mode = #tpu.pipeline_mode<synchronous>, transform_indices = @transform_1, window_bounds = array<i64: 32, 16>}, {pipeline_mode = #tpu.pipeline_mode<synchronous>, transform_indices = @transform_2, window_bounds = array<i64: 1, 16>}, {pipeline_mode = #tpu.pipeline_mode<synchronous>, transform_indices = @transform_3, window_bounds = array<i64: 1, 16>}, {transform_indices = @transform_4, window_bounds = array<i64: 2, 8, 32>}]} {
    %c0 = arith.constant 0 : index
    %c0_0 = arith.constant 0 : index
    %c0_1 = arith.constant 0 : index
    %0 = vector.load %arg1[%c0, %c0_0, %c0_1] : memref<2x8x32xf32, #tpu.memory_space<vmem>>, vector<2x8x32xf32>
    %1 = vector.shape_cast %0 : vector<2x8x32xf32> to vector<16x32xf32>
    %c0_2 = arith.constant 0 : index
    %c0_3 = arith.constant 0 : index
    %2 = vector.load %arg2[%c0_2, %c0_3] : memref<32x16xf32, #tpu.memory_space<vmem>>, vector<32x16xf32>
    %cst = arith.constant dense<0.000000e+00> : vector<16x16xf32>
    %3 = tpu.matmul %1, %2, %cst {dimension_numbers = #tpu.dot_dimension_numbers<[1], [0], [0], [1], [0, 0, 1, 1], [], []>} : vector<16x32xf32>, vector<32x16xf32>, vector<16x16xf32> -> vector<16x16xf32>
    %c0_4 = arith.constant 0 : index
    %c0_5 = arith.constant 0 : index
    %4 = vector.load %arg3[%c0_4, %c0_5] : memref<1x16xf32, #tpu.memory_space<vmem>>, vector<1x16xf32>
    %5 = vector.broadcast %4 : vector<1x16xf32> to vector<16x16xf32>
    %6 = arith.addf %3, %5 : vector<16x16xf32>
    %7 = math.tanh %6 : vector<16x16xf32>
    %c0_6 = arith.constant 0 : index
    %c0_7 = arith.constant 0 : index
    %8 = vector.load %arg4[%c0_6, %c0_7] : memref<1x16xf32, #tpu.memory_space<vmem>>, vector<1x16xf32>
    %9 = vector.broadcast %8 : vector<1x16xf32> to vector<16x16xf32>
    %10 = arith.mulf %7, %9 : vector<16x16xf32>
    %cst_8 = arith.constant dense<0.000000e+00> : vector<16xf32>
    %11 = vector.multi_reduction <add>, %10, %cst_8 [1] : vector<16x16xf32> to vector<16xf32>
    %12 = vector.shape_cast %11 : vector<16xf32> to vector<16x1xf32>
    %13 = vector.shape_cast %12 : vector<16x1xf32> to vector<2x8x1xf32>
    %cst_9 = arith.constant dense<0xFF800000> : vector<2x1xf32>
    %14 = vector.multi_reduction <maximumf>, %13, %cst_9 [1] : vector<2x8x1xf32> to vector<2x1xf32>
    %15 = vector.shape_cast %14 : vector<2x1xf32> to vector<2x1x1xf32>
    %16 = vector.broadcast %15 : vector<2x1x1xf32> to vector<2x8x1xf32>
    %17 = arith.subf %13, %16 : vector<2x8x1xf32>
    %18 = math.exp %17 : vector<2x8x1xf32>
    %cst_10 = arith.constant dense<0.000000e+00> : vector<2x1xf32>
    %19 = vector.multi_reduction <add>, %18, %cst_10 [1] : vector<2x8x1xf32> to vector<2x1xf32>
    %20 = vector.shape_cast %19 : vector<2x1xf32> to vector<2x1x1xf32>
    %21 = tpu.reciprocal %20 {approx = true} : vector<2x1x1xf32> -> vector<2x1x1xf32>
    %22 = vector.broadcast %21 : vector<2x1x1xf32> to vector<2x8x1xf32>
    %23 = arith.mulf %18, %22 : vector<2x8x1xf32>
    %24 = vector.broadcast %23 : vector<2x8x1xf32> to vector<2x8x32xf32>
    %25 = arith.mulf %0, %24 : vector<2x8x32xf32>
    %c0_11 = arith.constant 0 : index
    %c0_12 = arith.constant 0 : index
    %c0_13 = arith.constant 0 : index
    %26 = vector.load %arg5[%c0_11, %c0_12, %c0_13] : memref<2x8x32xf32, #tpu.memory_space<vmem>>, vector<2x8x32xf32>
    tpu.vector_store %arg5[%c0_11, %c0_12, %c0_13], %25 {strides = array<i32>} : memref<2x8x32xf32, #tpu.memory_space<vmem>>, vector<2x8x32xf32>,
    return
  }
  func.func @transform_0(%arg0: i32) -> (i32, i32, i32) {
    %c0_i32 = arith.constant 0 : i32
    %c0_i32_0 = arith.constant 0 : i32
    %c0_i32_1 = arith.constant 0 : i32
    return %arg0, %c0_i32, %c0_i32_0 : i32, i32, i32
  }
  func.func @transform_1(%arg0: i32) -> (i32, i32) {
    %c0_i32 = arith.constant 0 : i32
    %c0_i32_0 = arith.constant 0 : i32
    %c0_i32_1 = arith.constant 0 : i32
    return %c0_i32, %c0_i32_0 : i32, i32
  }
  func.func @transform_2(%arg0: i32) -> (i32, i32) {
    %c0_i32 = arith.constant 0 : i32
    %c0_i32_0 = arith.constant 0 : i32
    %c0_i32_1 = arith.constant 0 : i32
    return %c0_i32, %c0_i32_0 : i32, i32
  }
  func.func @transform_3(%arg0: i32) -> (i32, i32) {
    %c0_i32 = arith.constant 0 : i32
    %c0_i32_0 = arith.constant 0 : i32
    %c0_i32_1 = arith.constant 0 : i32
    return %c0_i32, %c0_i32_0 : i32, i32
  }
  func.func @transform_4(%arg0: i32) -> (i32, i32, i32) {
    %c0_i32 = arith.constant 0 : i32
    %c0_i32_0 = arith.constant 0 : i32
    %c0_i32_1 = arith.constant 0 : i32
    return %arg0, %c0_i32, %c0_i32_0 : i32, i32, i32
  }
}

</mosaic_0001>

<bundles_post_ra>
// kernel: tpu_custom_call.1
= control target key start
LH: loop header
LB: loop body
LE: loop exit
PB: predicated region body
PF: predicated region fallthrough
CT: control target
= control target key end

     0   :  { %9 = vsyncpa [#allocation3], 0  ;;  %s741_s0 = inlined_call_operand.vmem [shape: f32[4,8,32], index: 0, kind: input, shape index: {}]   ;;  %s742_s1 = inlined_call_operand.vmem [shape: f32[32,16], index: 1, kind: input, shape index: {}]   ;;  %s743_s2 = inlined_call_operand.vmem [shape: f32[1,16], index: 2, kind: input, shape index: {}]   ;;  %s744_s3 = inlined_call_operand.vmem [shape: f32[1,16], index: 3, kind: input, shape index: {}]   ;;  %s745_s4 = inlined_call_operand.hbm [shape: f32[4,8,32], index: 4, kind: output, shape index: {}]  }
   0x1   :  { %11 = vsyncpa [#allocation3 + $0x1], 0  ;;  %s613_s15 = smov 0   ;;  %s615_s16 = smov 0  }
   0x2   :  { %s617_s17 = smov 0   ;;  %s619_s18 = smov 0  }
   0x3 LB: > { %s634_s19 = sadd.s32 4294967295, %s583_s18   ;;  %s426_s20 = sadd.s32 4294967294, %s583_s18   ;;  %s583_s18 = sphi %s619_s18, %s751_s18   ;;  %s579_s17 = sphi %s617_s17, %s750_s17   ;;  %s575_s16 = sphi %s615_s16, %s749_s16   ;;  %s571_s15 = sphi %s613_s15, %s748_s15  }
   0x4   : > { %s638_s21 = sadd.s32 1, %s583_s18   ;;  %s113_s22 = sadd.s32 1, %s579_s17 }
   0x5   : > { %s110_s23 = ssub.s32 %s583_s18, %s638_s21  ;;  %p123_p0 = scmp.ne.s32.totalorder %s579_s17, %s575_s16 }
   0x6   : > { %p111_p1 = scmp.eq.s32.totalorder %s110_s23, 0  ;;  %p124_p2 = scmp.eq.s32.totalorder %s634_s19, 1 }
   0x7   : > { %p129_p3 = scmp.ne.s32.totalorder %s575_s16, %s571_s15  ;;  %p130_p4 = scmp.eq.s32.totalorder %s426_s20, 1 }
   0x8   : > { %s649_s24 = scalar_select %p111_p1, %s579_s17, %s113_s22  }
   0x9   : > { %p651_p5 = por %p124_p2, %p123_p0  ;;  %p655_p6 = por %p130_p4, %p129_p3 }
   0xa   : > { %p429_p7 = scmp.ge.s32.totalorder %s583_s18, 1  ;;  %p166_p8 = scmp.lt.s32.totalorder %s583_s18, 3 }
   0xc   : > { %p167_p9 = pnand %p429_p7, %p166_p8 }
   0xd   : > { %v201_v0 = vld [vmem:[%s742_s1] sm:$0xff] (!%p167_p9)  ;;  %v202_v1 = vld [vmem:[%s742_s1 + $0x8] sm:$0xff] (!%p167_p9)  ;;  %v203_v2 = vld [vmem:[%s742_s1 + $0x10] sm:$0xff] (!%p167_p9)  ;;  %s431_s7 = sshll.u32 (!%p167_p9), %s634_s19, 1  ;;  %vm212_vm0 = vcmask (!%p167_p9), 261120   ;;  %vm305_vm1 = vcmask (!%p167_p9), 130048  }
   0xe   : > { %170 = sbr.rel (%p167_p9) target bundleno = 470 (0x1d6), region = 36  ;;  %v460_v3 = vpack.c.bf16 (!%p167_p9), %v202_v1, %v201_v0  ;;  %v204_v4 = vld [vmem:[%s742_s1 + $0x18] sm:$0xff] (!%p167_p9)  ;;  %p193_p10 = scmp.lt.s32.totalorder (!%p167_p9), %s431_s7, 3  ;;  %v433_v8 = vld [vmem:[%s743_s2] ss:$0 sm:$0xff] (!%p167_p9) }
   0xf   : > { %v464_v5 = vpack.c.bf16 (!%p167_p9), %v204_v4, %v203_v2  ;;  %v436_v13 = vld [vmem:[%s744_s3] ss:$0 sm:$0xff] (!%p167_p9)  ;;  %s189_s27 = sand.u32 (!%p167_p9), 1, %s575_s16   ;;  %s442_s29 = sshll.u32 (!%p167_p9), %s634_s19, 8 }
  0x10   : > { %461 = vmatprep.subr.bf16.mxu0 (!%p167_p9), %v460_v3  ;;  %s430_s28 = sshll.u32 (!%p167_p9), %s189_s27, 4  ;;  %s694_s8 = scalar_lea.hbm (!%p167_p9), %s745_s4, %s442_s29 }
  0x11   : > { %463 = vmatpush3.bf16.msra.mxu0 (!%p167_p9), %v460_v3  ;;  %s191_s30 = scalar_lea.vmem (!%p167_p9), [#allocation2], %s430_s28  ;;  %s700_s19 = scalar_lea.sflag (!%p167_p9), [#allocation3], %s189_s27 }
  0x12   : > { %465 = vmatprep.subr.bf16.mxu0 (!%p167_p9), %v464_v5  ;;  %s364_s5 = sshll.u32 (!%p167_p9), %s191_s30, 4  ;;  %s696_s5 = int_to_ptr.vmem [resolvable:$true] %s364_s5 }
  0x13   : > { %s521_s9 = scalar_lea.vmem (!%p167_p9), %s696_s5, 256 }
  0x14   : > { %p522_p11 = scmp.ne.s32.totalorder (!%p167_p9), %s696_s5, %s521_s9 }
  0x15   : > { %s753_s7 = smov (!%p193_p10, %s431_s7), 3  ;;  %467 = vmatpush3.bf16.msra.mxu0 %v464_v5 }
  0x16   : > { %s432_s10 = sshll.u32 %s753_s7, 3  ;;  %p523_p12 = pnand %p522_p11, %p651_p5 }
  0x17   : > { %s196_s13 = scalar_lea.vmem %s741_s0, %s432_s10  ;;  %s585_s10 = smov [#allocation2]  }
  0x18   : > { %v199_v6 = vld [vmem:[%s196_s13] sm:$0xff]  ;;  %v677_v7 = vld [vmem:[%s196_s13 + $0x8] sm:$0xff]  ;;  %p524_p13 = pneg %p523_p12  ;;  %s525_s11 = sshll.u32 %s585_s10, 4  ;;  %s526_s11 = int_to_ptr.vmem [resolvable:$false] %s525_s11 }
  0x19   : > { %457 = vmatprep.mubr.msk.f32.mxu0 %vm212_vm0, %v199_v6  ;;  %s527_s12 = scalar_lea.vmem %s526_s11, 512  ;;  %p528_p0 = scmp.lt.s32.totalorder %s696_s5, %s526_s11 }
  0x1a   : > { %458 = vmatmul.mubr.msk.f32.vlgmr.msra.gmra.mrb[0].mxu0 %vm212_vm0, %v677_v7  ;;  %p529_p1 = scmp.lt.s32.totalorder %s527_s12, %s521_s9 }
  0x1c   : > { %p530_p2 = por %p529_p1, %p528_p0 }
  0x1e   : > { %p531_p3 = pnand %p530_p2, %p524_p13 }
  0xed   : > { %v459_v9 = vpop.f32.mrb[0].mxu0 }
  0xee   : > { %v291_v10 = vadd.f32 %v459_v9, %v433_v8  ;;  %v285_v11 = vpop.f32.mrb[1].mxu0 }
  0xef   : > { %v286_v12 = vadd.f32 %v433_v8, %v285_v11 }
  0xf0   : > { %509 = vtanh.f32 %v291_v10 }
  0xf1   : > { %511 = vtanh.f32 %v286_v12 }
  0xfa   : > { %v510_v14 = vpop.eup %509 }
  0xfb   : > { %v512_v15 = vpop.eup %511  ;;  %v304_v18 = vmul.f32 %v510_v14, %v436_v13 }
  0xfc   : > { %v303_v16 = vmul.f32 %v512_v15, %v436_v13 }
  0xfd   : > { %v309_v19 = vsel %vm305_vm1, %v304_v18, 0.0 }
  0xfe   : > { %v306_v17 = vsel %vm305_vm1, %v303_v16, 0.0 }
  0xff   : > { %307 = vadd.xlane.f32.xlu0 %v306_v17 }
 0x103   : > { %310 = vadd.xlane.f32.xlu0 %v309_v19 }
 0x18c   : > { %v308_v20 = vpop.xlane.xlu0 %307 }
 0x18d   : > { %v312_v21 = vrot.slane %v308_v20, 4 }
 0x18f   : > { %v313_v22 = vmax.f32 %v308_v20, %v312_v21 }
 0x190   : > { %v311_v23 = vpop.xlane.xlu0 %310 }
 0x191   : > { %v314_v24 = vrot.slane %v313_v22, 2  ;;  %v318_v25 = vrot.slane %v311_v23, 4 }
 0x193   : > { %v315_v26 = vmax.f32 %v313_v22, %v314_v24  ;;  %v319_v27 = vmax.f32 %v311_v23, %v318_v25 }
 0x195   : > { %v316_v28 = vrot.slane %v315_v26, 1  ;;  %v320_v29 = vrot.slane %v319_v27, 2 }
 0x197   : > { %v317_v30 = vmax.f32 %v315_v26, %v316_v28  ;;  %v321_v31 = vmax.f32 %v319_v27, %v320_v29 }
 0x199   : > { %v324_v32 = vsub.f32 %v308_v20, %v317_v30  ;;  %v322_v33 = vrot.slane %v321_v31, 1 }
 0x19b   : > { %v326_v34 = vmul.f32 1.442695, %v324_v32  ;;  %v323_v35 = vmax.f32 %v321_v31, %v322_v33 }
 0x19d   : > { %513 = vpow2.f32 %v326_v34  ;;  %v325_v36 = vsub.f32 %v311_v23, %v323_v35 }
 0x19f   : > { %v328_v37 = vmul.f32 1.442695, %v325_v36 }
 0x1a1   : > { %515 = vpow2.f32 %v328_v37 }
 0x1a7   : > { %v514_v38 = vpop.eup %513 }
 0x1a8   : > { %v330_v39 = vrot.slane %v514_v38, 4 }
 0x1aa   : > { %v331_v40 = vadd.f32 %v514_v38, %v330_v39 }
 0x1ab   : > { %v516_v41 = vpop.eup %515 }
 0x1ac   : > { %v332_v42 = vrot.slane %v331_v40, 2  ;;  %v336_v43 = vrot.slane %v516_v41, 4 }
 0x1ae   : > { %v333_v44 = vadd.f32 %v332_v42, %v331_v40  ;;  %v337_v45 = vadd.f32 %v516_v41, %v336_v43 }
 0x1b0   : > { %v338_v46 = vrot.slane %v337_v45, 2  ;;  %v334_v47 = vrot.slane %v333_v44, 1 }
 0x1b2   : > { %v339_v48 = vadd.f32 %v338_v46, %v337_v45  ;;  %v335_v49 = vadd.f32 %v334_v47, %v333_v44 }
 0x1b4   : > { %v340_v50 = vrot.slane %v339_v48, 1  ;;  %517 = vrcp.f32 %v335_v49 }
 0x1b6   : > { %v341_v51 = vadd.f32 %v340_v50, %v339_v48 }
 0x1b8   : > { %519 = vrcp.f32 %v341_v51 }
 0x1be   : > { %v518_v52 = vpop.eup %517 }
 0x1bf   : > { %v344_v53 = vmul.f32 %v518_v52, %v514_v38 }
 0x1c1   : > { %v346_v54 = vmul.f32 %v344_v53, %v199_v6 }
 0x1c2   : > { %v520_v55 = vpop.eup %519 }
 0x1c3   : > { %v345_v56 = vmul.f32 %v520_v55, %v516_v41  ;;  %348 = vst.msk [vmem:[%s191_s30] sm:$0xff] %vm212_vm0, %v346_v54 }
 0x1c5   : > { %v347_v57 = vmul.f32 %v345_v56, %v677_v7 }
 0x1c7   : > { %349 = vst.msk [vmem:[%s191_s30 + $0x8] sm:$0xff] %vm212_vm0, %v347_v57 }
 0x1c8   : > { %534 = shalt.err (!%p531_p3)
}
 0x1c9   : > { %s535_s13 = scalar_lea.hbm %s694_s8, 256  ;;  %s539_s22 = scalar_lea.hbm %s745_s4, 512 }
 0x1ca   : > { %p536_p4 = scmp.ne.s32.totalorder %s694_s8, %s535_s13  ;;  %p540_p9 = scmp.lt.u32.totalorder %s694_s8, %s745_s4 }
 0x1cb   : > { %p541_p10 = scmp.lt.u32.totalorder %s539_s22, %s535_s13  ;;  %p543_p12 = scmp.lt.u32.totalorder %s535_s13, %s694_s8 }
 0x1cc   : > { %p537_p7 = pnand %p536_p4, %p651_p5 }
 0x1cd   : > { %p542_p11 = por %p541_p10, %p540_p9 }
 0x1ce   : > { %p538_p8 = pneg %p537_p7 }
 0x1cf   : > { %p544_p13 = por %p543_p12, %p542_p11 }
 0x1d1   : > { %p545_p0 = pnand %p544_p13, %p538_p8 }
 0x1d3   : > { %548 = shalt.err (!%p545_p0)
}
 0x1d4   : > { %s586_s28 = smov 128   ;;  %s587_s29 = smov 8  }
 0x1d5   : > { %468 = dma.vmem_to_hbm [thread:$0]  (%p651_p5), %s696_s5, 256, %s694_s8, %s700_s19, %s586_s28, %s586_s28, %s587_s29  }
 0x1d6 PF: > { %p474_p1 = scmp.ge.s32.totalorder %s583_s18, 2  ;;  %s379_s30 = sand.u32 1, %s571_s15  }
 0x1d7   : > { %s380_s6 = scalar_lea.sflag [#allocation3], %s379_s30 }
 0x1d8   : > { %p471_p2 = pnand %p474_p1, %p655_p6 }
 0x1da   : > { %566 = dma.done.wait (!%p471_p2), %s380_s6, 256  }
 0x1db   : > { %568 = vsyncadd (!%p471_p2), %s380_s6, 4294967040  ;;  %p14_p3 = scmp.ge.s32.totalorder %s638_s21, 4   ;;  %s748_s15 = smov %s575_s16 }
 0x1dc   : > { %s749_s16 = smov %s579_s17  ;;  %s750_s17 = smov %s649_s24 }
 0x1dd   : > { %s751_s18 = smov %s638_s21  ;;  %16 = sbr.rel (!%p14_p3) target bundleno = 3 (0x3), region = 71 }
 0x1e4   :  { %385 = vsyncpa [#allocation3], 1 }
 0x1e5   :  { %387 = vsyncpa [#allocation3 + $0x1], 1 }

</bundles_post_ra>
